<compile_context>
chip_gen: v7x
topology: tpu7x:2x2x1
jax: 0.10.0
libtpu: 0.0.40
codegen_flags: <defaults>
</compile_context>

<pallas_src>
import functools

import jax
import jax.numpy as jnp
from jax.experimental import pallas as pl
from jax.experimental.pallas import tpu as pltpu


def _pixel_encoding_kernel(tokens_ref, table_ref, out_ref, *, vc, v_total, seq_len):
    """Gather seq_len embedding rows for one sequence.

    tokens_ref: SMEM (num_seqs * seq_len,) int32   (scalar-prefetched token ids)
    table_ref : VMEM (v_total, 1, D) float32       (fused [cond; pixel] table)
    out_ref   : VMEM (seq_len, D)    float32       (this sequence's output block)
    """
    base = pl.program_id(0) * seq_len
    # seq_len is tiny (8) -> static unroll; each step is one scalar SMEM read,
    # a couple of scalar-unit ops, one (1, D) VMEM load and one (1, D) store.
    for i in range(seq_len):
        tok = tokens_ref[base + i]
        # Position 0 indexes the cond table (rows [0, vc)); positions 1.. index
        # the pixel table (rows [vc, v_total)).
        row = tok if i == 0 else tok + vc
        # nn.Embedding raises on out-of-range ids; we clamp instead of reading
        # arbitrary VMEM.  Valid inputs are unaffected.
        row = jnp.clip(row, 0, v_total - 1)
        out_ref[pl.ds(i, 1), :] = table_ref[row]


def make_pixel_encoding(cond_table, pixel_table):
    """Init-time setup (all table work hoisted out of the per-call path).

    Builds the fused [cond_table; pixel_table] table once, in f32, laid out as
    (V, 1, D) so in-kernel row gathers index the untiled leading dimension.
    Returns (forward, forward_batched).
    """
    vc, d = cond_table.shape
    vp, d2 = pixel_table.shape
    assert d == d2, "embedding dims must match"
    v_total = vc + vp

    fused = jnp.concatenate(
        [cond_table.astype(jnp.float32), pixel_table.astype(jnp.float32)], axis=0
    ).reshape(v_total, 1, d)

    @jax.jit
    def forward(tokens):
        """(S,) int -> (S, D) f32.  Matches PixelEncoding.forward exactly."""
        (s,) = tokens.shape
        return pl.pallas_call(
            functools.partial(_pixel_encoding_kernel,
                              vc=vc, v_total=v_total, seq_len=s),
            out_shape=jax.ShapeDtypeStruct((s, d), jnp.float32),
            grid_spec=pltpu.PrefetchScalarGridSpec(
                num_scalar_prefetch=1,                      # tokens -> SMEM
                grid=(1,),
                in_specs=[pl.BlockSpec((v_total, 1, d), lambda i, tok: (0, 0, 0))],
                out_specs=pl.BlockSpec((s, d), lambda i, tok: (0, 0)),
            ),
            compiler_params=pltpu.CompilerParams(
                dimension_semantics=("arbitrary",)),
        )(tokens.astype(jnp.int32), fused)

    @jax.jit
    def forward_batched(tokens):
        """(B, S) int -> (B, S, D) f32.  One launch, one table DMA; the batch
        grid axis is "parallel" so v7x shards it across its 2 TensorCores."""
        b, s = tokens.shape
        return pl.pallas_call(
            functools.partial(_pixel_encoding_kernel,
                              vc=vc, v_total=v_total, seq_len=s),
            out_shape=jax.ShapeDtypeStruct((b, s, d), jnp.float32),
            grid_spec=pltpu.PrefetchScalarGridSpec(
                num_scalar_prefetch=1,
                grid=(b,),
                in_specs=[pl.BlockSpec((v_total, 1, d),
                                       lambda bi, tok: (0, 0, 0))],
                out_specs=pl.BlockSpec((None, s, d),
                                       lambda bi, tok: (bi, 0, 0)),
            ),
            compiler_params=pltpu.CompilerParams(
                dimension_semantics=("parallel",)),
        )(tokens.astype(jnp.int32).reshape(-1), fused)

    return forward, forward_batched


if __name__ == "__main__":
    # Module config (class_cond=False): n_tokens=16, d_model=32, n_classes -> 1.
    n_tokens, d_model, n_classes = 16, 32, 1
    seq, batch = 8, 4

    key = jax.random.PRNGKey(0)
    k1, k2, k3, k4 = jax.random.split(key, 4)

    # Deterministic "weights" (nn.Embedding default init: N(0, 1)).
    pixel_table = jax.random.normal(k1, (n_tokens, d_model), jnp.float32)
    cond_table = jax.random.normal(k2, (n_classes, d_model), jnp.float32)

    # tokens[0] indexes cond_embed (must be < n_classes == 1 -> 0),
    # tokens[1:] index pixel_embed.
    tokens = jax.random.randint(k3, (seq,), 0, n_tokens, jnp.int32).at[0].set(0)
    tokens_b = jax.random.randint(k4, (batch, seq), 0, n_tokens, jnp.int32)
    tokens_b = tokens_b.at[:, 0].set(0)

    forward, forward_batched = make_pixel_encoding(cond_table, pixel_table)

    out = jax.block_until_ready(forward(tokens))
    out_b = jax.block_until_ready(forward_batched(tokens_b))

    def ref_single(t):
        return jnp.concatenate(
            [jnp.take(cond_table, t[0:1], axis=0),
             jnp.take(pixel_table, t[1:], axis=0)], axis=0)

    ref = ref_single(tokens)
    ref_b = jnp.stack([ref_single(tokens_b[i]) for i in range(batch)], axis=0)

    assert out.shape == (seq, d_model) and out.dtype == jnp.float32
    assert out_b.shape == (batch, seq, d_model) and out_b.dtype == jnp.float32
    # Pure f32 gather -> results are bit-exact vs. the f32 module reference.
    assert jnp.allclose(out, ref, atol=0.0), "single-sequence mismatch"
    assert jnp.allclose(out_b, ref_b, atol=0.0), "batched mismatch"

    print("KERNEL_OK")
</pallas_src>

<mosaic_0001>
module attributes {stable_mosaic.version = 11 : i64} {
  func.func @_pixel_encoding_kernel(%arg0: i32, %arg1: memref<8xi32, #tpu.memory_space<smem>>, %arg2: memref<17x1x32xf32, #tpu.memory_space<vmem>>, %arg3: memref<8x32xf32, #tpu.memory_space<vmem>>) attributes {dimension_semantics = [#tpu.dimension_semantics<arbitrary>], iteration_bounds = array<i64: 1>, scalar_prefetch = 1 : i64, scratch_operands = 0 : i64, tpu.core_type = #tpu.core_type<tc>, window_params = [{pipeline_mode = #tpu.pipeline_mode<synchronous>, transform_indices = @transform_0, window_bounds = array<i64: 17, 1, 32>}, {pipeline_mode = #tpu.pipeline_mode<synchronous>, transform_indices = @transform_1, window_bounds = array<i64: 8, 32>}]} {
    %c8_i32 = arith.constant 8 : i32
    %0 = arith.muli %arg0, %c8_i32 : i32
    %c0_i32 = arith.constant 0 : i32
    %1 = arith.addi %0, %c0_i32 : i32
    %2 = arith.index_cast %1 : i32 to index
    %3 = memref.load %arg1[%2] : memref<8xi32, #tpu.memory_space<smem>>
    %c0_i32_0 = arith.constant 0 : i32
    %c16_i32 = arith.constant 16 : i32
    %4 = arith.maxsi %c0_i32_0, %3 : i32
    %5 = arith.minsi %c16_i32, %4 : i32
    %6 = arith.index_cast %5 : i32 to index
    %c0 = arith.constant 0 : index
    %c0_1 = arith.constant 0 : index
    %7 = vector.load %arg2[%6, %c0, %c0_1] : memref<17x1x32xf32, #tpu.memory_space<vmem>>, vector<1x1x32xf32>
    %8 = vector.shape_cast %7 : vector<1x1x32xf32> to vector<1x32xf32>
    %c0_2 = arith.constant 0 : index
    %c0_3 = arith.constant 0 : index
    %9 = vector.load %arg3[%c0_2, %c0_3] : memref<8x32xf32, #tpu.memory_space<vmem>>, vector<1x32xf32>
    tpu.vector_store %arg3[%c0_2, %c0_3], %8 {strides = array<i32>} : memref<8x32xf32, #tpu.memory_space<vmem>>, vector<1x32xf32>,
    %c1_i32 = arith.constant 1 : i32
    %10 = arith.addi %0, %c1_i32 : i32
    %11 = arith.index_cast %10 : i32 to index
    %12 = memref.load %arg1[%11] : memref<8xi32, #tpu.memory_space<smem>>
    %c1_i32_4 = arith.constant 1 : i32
    %13 = arith.addi %12, %c1_i32_4 : i32
    %c0_i32_5 = arith.constant 0 : i32
    %c16_i32_6 = arith.constant 16 : i32
    %14 = arith.maxsi %c0_i32_5, %13 : i32
    %15 = arith.minsi %c16_i32_6, %14 : i32
    %16 = arith.index_cast %15 : i32 to index
    %c0_7 = arith.constant 0 : index
    %c0_8 = arith.constant 0 : index
    %17 = vector.load %arg2[%16, %c0_7, %c0_8] : memref<17x1x32xf32, #tpu.memory_space<vmem>>, vector<1x1x32xf32>
    %18 = vector.shape_cast %17 : vector<1x1x32xf32> to vector<1x32xf32>
    %c1 = arith.constant 1 : index
    %c0_9 = arith.constant 0 : index
    %19 = vector.load %arg3[%c1, %c0_9] : memref<8x32xf32, #tpu.memory_space<vmem>>, vector<1x32xf32>
    tpu.vector_store %arg3[%c1, %c0_9], %18 {strides = array<i32>} : memref<8x32xf32, #tpu.memory_space<vmem>>, vector<1x32xf32>,
    %c2_i32 = arith.constant 2 : i32
    %20 = arith.addi %0, %c2_i32 : i32
    %21 = arith.index_cast %20 : i32 to index
    %22 = memref.load %arg1[%21] : memref<8xi32, #tpu.memory_space<smem>>
    %c1_i32_10 = arith.constant 1 : i32
    %23 = arith.addi %22, %c1_i32_10 : i32
    %c0_i32_11 = arith.constant 0 : i32
    %c16_i32_12 = arith.constant 16 : i32
    %24 = arith.maxsi %c0_i32_11, %23 : i32
    %25 = arith.minsi %c16_i32_12, %24 : i32
    %26 = arith.index_cast %25 : i32 to index
    %c0_13 = arith.constant 0 : index
    %c0_14 = arith.constant 0 : index
    %27 = vector.load %arg2[%26, %c0_13, %c0_14] : memref<17x1x32xf32, #tpu.memory_space<vmem>>, vector<1x1x32xf32>
    %28 = vector.shape_cast %27 : vector<1x1x32xf32> to vector<1x32xf32>
    %c2 = arith.constant 2 : index
    %c0_15 = arith.constant 0 : index
    %29 = vector.load %arg3[%c2, %c0_15] : memref<8x32xf32, #tpu.memory_space<vmem>>, vector<1x32xf32>
    tpu.vector_store %arg3[%c2, %c0_15], %28 {strides = array<i32>} : memref<8x32xf32, #tpu.memory_space<vmem>>, vector<1x32xf32>,
    %c3_i32 = arith.constant 3 : i32
    %30 = arith.addi %0, %c3_i32 : i32
    %31 = arith.index_cast %30 : i32 to index
    %32 = memref.load %arg1[%31] : memref<8xi32, #tpu.memory_space<smem>>
    %c1_i32_16 = arith.constant 1 : i32
    %33 = arith.addi %32, %c1_i32_16 : i32
    %c0_i32_17 = arith.constant 0 : i32
    %c16_i32_18 = arith.constant 16 : i32
    %34 = arith.maxsi %c0_i32_17, %33 : i32
    %35 = arith.minsi %c16_i32_18, %34 : i32
    %36 = arith.index_cast %35 : i32 to index
    %c0_19 = arith.constant 0 : index
    %c0_20 = arith.constant 0 : index
    %37 = vector.load %arg2[%36, %c0_19, %c0_20] : memref<17x1x32xf32, #tpu.memory_space<vmem>>, vector<1x1x32xf32>
    %38 = vector.shape_cast %37 : vector<1x1x32xf32> to vector<1x32xf32>
    %c3 = arith.constant 3 : index
    %c0_21 = arith.constant 0 : index
    %39 = vector.load %arg3[%c3, %c0_21] : memref<8x32xf32, #tpu.memory_space<vmem>>, vector<1x32xf32>
    tpu.vector_store %arg3[%c3, %c0_21], %38 {strides = array<i32>} : memref<8x32xf32, #tpu.memory_space<vmem>>, vector<1x32xf32>,
    %c4_i32 = arith.constant 4 : i32
    %40 = arith.addi %0, %c4_i32 : i32
    %41 = arith.index_cast %40 : i32 to index
    %42 = memref.load %arg1[%41] : memref<8xi32, #tpu.memory_space<smem>>
    %c1_i32_22 = arith.constant 1 : i32
    %43 = arith.addi %42, %c1_i32_22 : i32
    %c0_i32_23 = arith.constant 0 : i32
    %c16_i32_24 = arith.constant 16 : i32
    %44 = arith.maxsi %c0_i32_23, %43 : i32
    %45 = arith.minsi %c16_i32_24, %44 : i32
    %46 = arith.index_cast %45 : i32 to index
    %c0_25 = arith.constant 0 : index
    %c0_26 = arith.constant 0 : index
    %47 = vector.load %arg2[%46, %c0_25, %c0_26] : memref<17x1x32xf32, #tpu.memory_space<vmem>>, vector<1x1x32xf32>
    %48 = vector.shape_cast %47 : vector<1x1x32xf32> to vector<1x32xf32>
    %c4 = arith.constant 4 : index
    %c0_27 = arith.constant 0 : index
    %49 = vector.load %arg3[%c4, %c0_27] : memref<8x32xf32, #tpu.memory_space<vmem>>, vector<1x32xf32>
    tpu.vector_store %arg3[%c4, %c0_27], %48 {strides = array<i32>} : memref<8x32xf32, #tpu.memory_space<vmem>>, vector<1x32xf32>,
    %c5_i32 = arith.constant 5 : i32
    %50 = arith.addi %0, %c5_i32 : i32
    %51 = arith.index_cast %50 : i32 to index
    %52 = memref.load %arg1[%51] : memref<8xi32, #tpu.memory_space<smem>>
    %c1_i32_28 = arith.constant 1 : i32
    %53 = arith.addi %52, %c1_i32_28 : i32
    %c0_i32_29 = arith.constant 0 : i32
    %c16_i32_30 = arith.constant 16 : i32
    %54 = arith.maxsi %c0_i32_29, %53 : i32
    %55 = arith.minsi %c16_i32_30, %54 : i32
    %56 = arith.index_cast %55 : i32 to index
    %c0_31 = arith.constant 0 : index
    %c0_32 = arith.constant 0 : index
    %57 = vector.load %arg2[%56, %c0_31, %c0_32] : memref<17x1x32xf32, #tpu.memory_space<vmem>>, vector<1x1x32xf32>
    %58 = vector.shape_cast %57 : vector<1x1x32xf32> to vector<1x32xf32>
    %c5 = arith.constant 5 : index
    %c0_33 = arith.constant 0 : index
    %59 = vector.load %arg3[%c5, %c0_33] : memref<8x32xf32, #tpu.memory_space<vmem>>, vector<1x32xf32>
    tpu.vector_store %arg3[%c5, %c0_33], %58 {strides = array<i32>} : memref<8x32xf32, #tpu.memory_space<vmem>>, vector<1x32xf32>,
    %c6_i32 = arith.constant 6 : i32
    %60 = arith.addi %0, %c6_i32 : i32
    %61 = arith.index_cast %60 : i32 to index
    %62 = memref.load %arg1[%61] : memref<8xi32, #tpu.memory_space<smem>>
    %c1_i32_34 = arith.constant 1 : i32
    %63 = arith.addi %62, %c1_i32_34 : i32
    %c0_i32_35 = arith.constant 0 : i32
    %c16_i32_36 = arith.constant 16 : i32
    %64 = arith.maxsi %c0_i32_35, %63 : i32
    %65 = arith.minsi %c16_i32_36, %64 : i32
    %66 = arith.index_cast %65 : i32 to index
    %c0_37 = arith.constant 0 : index
    %c0_38 = arith.constant 0 : index
    %67 = vector.load %arg2[%66, %c0_37, %c0_38] : memref<17x1x32xf32, #tpu.memory_space<vmem>>, vector<1x1x32xf32>
    %68 = vector.shape_cast %67 : vector<1x1x32xf32> to vector<1x32xf32>
    %c6 = arith.constant 6 : index
    %c0_39 = arith.constant 0 : index
    %69 = vector.load %arg3[%c6, %c0_39] : memref<8x32xf32, #tpu.memory_space<vmem>>, vector<1x32xf32>
    tpu.vector_store %arg3[%c6, %c0_39], %68 {strides = array<i32>} : memref<8x32xf32, #tpu.memory_space<vmem>>, vector<1x32xf32>,
    %c7_i32 = arith.constant 7 : i32
    %70 = arith.addi %0, %c7_i32 : i32
    %71 = arith.index_cast %70 : i32 to index
    %72 = memref.load %arg1[%71] : memref<8xi32, #tpu.memory_space<smem>>
    %c1_i32_40 = arith.constant 1 : i32
    %73 = arith.addi %72, %c1_i32_40 : i32
    %c0_i32_41 = arith.constant 0 : i32
    %c16_i32_42 = arith.constant 16 : i32
    %74 = arith.maxsi %c0_i32_41, %73 : i32
    %75 = arith.minsi %c16_i32_42, %74 : i32
    %76 = arith.index_cast %75 : i32 to index
    %c0_43 = arith.constant 0 : index
    %c0_44 = arith.constant 0 : index
    %77 = vector.load %arg2[%76, %c0_43, %c0_44] : memref<17x1x32xf32, #tpu.memory_space<vmem>>, vector<1x1x32xf32>
    %78 = vector.shape_cast %77 : vector<1x1x32xf32> to vector<1x32xf32>
    %c7 = arith.constant 7 : index
    %c0_45 = arith.constant 0 : index
    %79 = vector.load %arg3[%c7, %c0_45] : memref<8x32xf32, #tpu.memory_space<vmem>>, vector<1x32xf32>
    tpu.vector_store %arg3[%c7, %c0_45], %78 {strides = array<i32>} : memref<8x32xf32, #tpu.memory_space<vmem>>, vector<1x32xf32>,
    return
  }
  func.func @transform_0(%arg0: i32, %arg1: memref<8xi32, #tpu.memory_space<smem>>) -> (i32, i32, i32) {
    %c0_i32 = arith.constant 0 : i32
    %c0_i32_0 = arith.constant 0 : i32
    %c0_i32_1 = arith.constant 0 : i32
    %c0_i32_2 = arith.constant 0 : i32
    return %c0_i32, %c0_i32_0, %c0_i32_1 : i32, i32, i32
  }
  func.func @transform_1(%arg0: i32, %arg1: memref<8xi32, #tpu.memory_space<smem>>) -> (i32, i32) {
    %c0_i32 = arith.constant 0 : i32
    %c0_i32_0 = arith.constant 0 : i32
    %c0_i32_1 = arith.constant 0 : i32
    return %c0_i32, %c0_i32_0 : i32, i32
  }
}

</mosaic_0001>

<bundles_post_ra>
// kernel: forward.1
= control target key start
LH: loop header
LB: loop body
LE: loop exit
PB: predicated region body
PF: predicated region fallthrough
CT: control target
= control target key end

     0   :  { %s332_s0 = inlined_call_operand.hbm [shape: s32[8], index: 0, kind: input, shape index: {}]   ;;  %s333_s1 = inlined_call_operand.hbm [shape: f32[17,1,32], index: 1, kind: input, shape index: {}]   ;;  %s334_s2 = inlined_call_operand.hbm [shape: f32[8,32], index: 2, kind: output, shape index: {}]  }
   0x1   :  { %s199_s11 = scalar_lea.hbm %s332_s0, 16 }
   0x2   :  { %p200_p0 = scmp.ne.s32.totalorder %s332_s0, %s199_s11  ;;  %p203_p1 = scmp.lt.u32.totalorder %s199_s11, %s332_s0 }
   0x4   :  { %p205_p2 = pnand %p203_p1, %p200_p0 }
   0x6   :  { %208 = shalt.err (!%p205_p2)  }
   0x7   :  { %s259_s16 = smov [#allocation3]  }
   0x8   :  { %8 = dma.hbm_to_smem %s332_s0, 16, %s259_s16, [#allocation2] }
   0x9   :  { %253 = dma.done.wait [#allocation2], 16 }
   0xa   :  { %254 = vsyncadd [#allocation2], 4294967280 }
   0xb   :  { %10 = sfence }
   0xc   :  { %11 = vsyncpa [#allocation5], 0 }
   0xd   :  { %12 = vsyncpa [#allocation6], 0  ;;  %s260_s19 = smov [#allocation4]   ;;  %s209_s23 = scalar_lea.hbm %s333_s1, 272 }
   0xe   :  { %s18_s20 = sshll.u32 %s260_s19, 4  ;;  %p210_p3 = scmp.ne.s32.totalorder %s333_s1, %s209_s23  ;;  %s19_s20 = int_to_ptr.vmem [resolvable:$true] %s18_s20 }
   0xf   :  { %p213_p4 = scmp.lt.u32.totalorder %s209_s23, %s333_s1 }
  0x11   :  { %p215_p5 = pnand %p213_p4, %p210_p3 }
  0x13   :  { %218 = shalt.err (!%p215_p5)
}
  0x14   :  { %s219_s0 = scalar_lea.vmem %s19_s20, 272  ;;  %s223_s28 = scalar_lea.vmem %s19_s20, 288 }
  0x15   :  { %p220_p6 = scmp.ne.s32.totalorder %s19_s20, %s219_s0  ;;  %p224_p7 = scmp.lt.s32.totalorder %s19_s20, %s19_s20 }
  0x16   :  { %p225_p8 = scmp.lt.s32.totalorder %s223_s28, %s219_s0 }
  0x18   :  { %p226_p9 = por %p225_p8, %p224_p7 }
  0x1a   :  { %p227_p10 = pnand %p226_p9, %p220_p6 }
  0x1c   :  { %230 = shalt.err (!%p227_p10)
}
  0x1d   :  { %s261_s29 = smov 16   ;;  %s262_s30 = smov 1  }
  0x1e   :  { %24 = dma.hbm_to_vmem [thread:$0]  %s333_s1, 272, %s19_s20, [#allocation5], %s261_s29, %s261_s29, %s262_s30  }
  0x1f   :  { %255 = dma.done.wait [#allocation5], 272  }
  0x20   :  { %256 = vsyncadd [#allocation5], 4294967024  ;;  %s29_s5 = sld [smem:[#allocation3]]  ;;  %s136_s6 = sld [smem:[#allocation3 + $0x1]]  ;;  %vm36_vm0 = vcmask 253952  }
  0x21   :  { %s142_s7 = sld [smem:[#allocation3 + $0x2]]  ;;  %s148_s8 = sld [smem:[#allocation3 + $0x3]] }
  0x22   :  { %s154_s9 = sld [smem:[#allocation3 + $0x4]]  ;;  %s303_s10 = sld [smem:[#allocation3 + $0x5]] }
  0x23   :  { %s305_s11 = sld [smem:[#allocation3 + $0x6]]  ;;  %s307_s12 = sld [smem:[#allocation3 + $0x7]] }
  0x24   :  { %s263_s28 = smov [#allocation7]  }
  0x25   :  { %s114_s29 = sshll.u32 %s263_s28, 4  ;;  %s115_s29 = int_to_ptr.vmem [resolvable:$true] %s114_s29 }
  0x26   :  { %p30_p11 = scmp.gt.s32.totalorder %s29_s5, 0  ;;  %p131_p12 = scmp.lt.s32.totalorder %s29_s5, 16 }
  0x27   :  { %s40_s13 = sadd.s32 1, %s136_s6  ;;  %s50_s14 = sadd.s32 1, %s142_s7 }
  0x28   :  { %s336_s5 = smov (!%p30_p11, %s29_s5), 0  ;;  %p41_p13 = scmp.gt.s32.totalorder %s40_s13, 0 }
  0x29   :  { %p137_p0 = scmp.lt.s32.totalorder %s40_s13, 16  ;;  %s338_s5 = smov (!%p131_p12, %s336_s5), 16 }
  0x2a   :  { %s340_s13 = smov (!%p41_p13, %s40_s13), 0  ;;  %p51_p1 = scmp.gt.s32.totalorder %s50_s14, 0 }
  0x2b   :  { %s34_s1 = scalar_lea.vmem [#allocation4], %s338_s5  ;;  %s342_s13 = smov (!%p137_p0, %s340_s13), 16 }
  0x2c   :  { %v35_v0 = vld [vmem:[%s34_s1] sm:$0x1]  ;;  %s52_s15 = scalar_select %p51_p1, %s50_s14, 0 }
  0x2d   :  { %37 = vst.msk [vmem:[#allocation7] sm:$0x1] %vm36_vm0, %v35_v0  ;;  %p143_p2 = scmp.lt.s32.totalorder %s50_s14, 16  ;;  %s45_s16 = scalar_lea.vmem [#allocation4], %s342_s13 }
  0x2e   :  { %v46_v1 = vld [vmem:[%s45_s16] sm:$0x1]  ;;  %s60_s17 = sadd.s32 1, %s148_s8  ;;  %s70_s18 = sadd.s32 1, %s154_s9 }
  0x2f   :  { %47 = vst.msk [vmem:[#allocation7 + $0x1] sm:$0x1] %vm36_vm0, %v46_v1  ;;  %s344_s15 = smov (!%p143_p2, %s52_s15), 16  ;;  %p61_p3 = scmp.gt.s32.totalorder %s60_s17, 0 }
  0x30   :  { %p149_p4 = scmp.lt.s32.totalorder %s60_s17, 16  ;;  %p71_p5 = scmp.gt.s32.totalorder %s70_s18, 0 }
  0x31   :  { %s55_s19 = scalar_lea.vmem [#allocation4], %s344_s15  ;;  %s346_s17 = smov (!%p61_p3, %s60_s17), 0 }
  0x32   :  { %v56_v2 = vld [vmem:[%s55_s19] sm:$0x1]  ;;  %s72_s20 = scalar_select %p71_p5, %s70_s18, 0 }
  0x33   :  { %57 = vst.msk [vmem:[#allocation7 + $0x2] sm:$0x1] %vm36_vm0, %v56_v2  ;;  %s348_s17 = smov (!%p149_p4, %s346_s17), 16  ;;  %p155_p6 = scmp.lt.s32.totalorder %s70_s18, 16 }
  0x34   :  { %s80_s21 = sadd.s32 1, %s303_s10  ;;  %s65_s22 = scalar_lea.vmem [#allocation4], %s348_s17 }
  0x35   :  { %p81_p7 = scmp.gt.s32.totalorder %s80_s21, 0  ;;  %v66_v3 = vld [vmem:[%s65_s22] sm:$0x1]  ;;  %s350_s20 = smov (!%p155_p6, %s72_s20), 16 }
  0x36   :  { %67 = vst.msk [vmem:[#allocation7 + $0x3] sm:$0x1] %vm36_vm0, %v66_v3  ;;  %p161_p8 = scmp.lt.s32.totalorder %s80_s21, 16  ;;  %s75_s24 = scalar_lea.vmem [#allocation4], %s350_s20 }
  0x37   :  { %s82_s23 = scalar_select %p81_p7, %s80_s21, 0  ;;  %v76_v4 = vld [vmem:[%s75_s24] sm:$0x1] }
  0x38   :  { %s90_s25 = sadd.s32 1, %s305_s11  ;;  %s100_s26 = sadd.s32 1, %s307_s12  ;;  %77 = vst.msk [vmem:[#allocation7 + $0x4] sm:$0x1] %vm36_vm0, %v76_v4 }
  0x39   :  { %s352_s23 = smov (!%p161_p8, %s82_s23), 16  ;;  %p91_p9 = scmp.gt.s32.totalorder %s90_s25, 0 }
  0x3a   :  { %p167_p10 = scmp.lt.s32.totalorder %s90_s25, 16  ;;  %p101_p11 = scmp.gt.s32.totalorder %s100_s26, 0 }
  0x3b   :  { %s85_s27 = scalar_lea.vmem [#allocation4], %s352_s23  ;;  %s354_s25 = smov (!%p91_p9, %s90_s25), 0 }
  0x3c   :  { %v86_v5 = vld [vmem:[%s85_s27] sm:$0x1]  ;;  %s102_s0 = scalar_select %p101_p11, %s100_s26, 0 }
  0x3d   :  { %87 = vst.msk [vmem:[#allocation7 + $0x5] sm:$0x1] %vm36_vm0, %v86_v5  ;;  %s356_s25 = smov (!%p167_p10, %s354_s25), 16  ;;  %p173_p12 = scmp.lt.s32.totalorder %s100_s26, 16 }
  0x3e   :  { %s95_s30 = scalar_lea.vmem [#allocation4], %s356_s25  ;;  %s231_s4 = scalar_lea.vmem %s115_s29, 128 }
  0x3f   :  { %v96_v6 = vld [vmem:[%s95_s30] sm:$0x1]  ;;  %s358_s0 = smov (!%p173_p12, %s102_s0), 16  ;;  %p232_p13 = scmp.ne.s32.totalorder %s115_s29, %s231_s4 }
  0x40   :  { %97 = vst.msk [vmem:[#allocation7 + $0x6] sm:$0x1] %vm36_vm0, %v96_v6  ;;  %s105_s3 = scalar_lea.vmem [#allocation4], %s358_s0  ;;  %p236_p0 = scmp.lt.s32.totalorder %s115_s29, %s115_s29 }
  0x41   :  { %v106_v7 = vld [vmem:[%s105_s3] sm:$0x1]  ;;  %p237_p1 = scmp.lt.s32.totalorder %s231_s4, %s231_s4 }
  0x42   :  { %107 = vst.msk [vmem:[#allocation7 + $0x7] sm:$0x1] %vm36_vm0, %v106_v7 }
  0x43   :  { %p238_p2 = por %p237_p1, %p236_p0 }
  0x45   :  { %p239_p3 = pnand %p238_p2, %p232_p13 }
  0x47   :  { %242 = shalt.err (!%p239_p3)
}
  0x48   :  { %s243_s7 = scalar_lea.hbm %s334_s2, 128 }
  0x49   :  { %p244_p4 = scmp.ne.s32.totalorder %s334_s2, %s243_s7  ;;  %p247_p5 = scmp.lt.u32.totalorder %s243_s7, %s334_s2 }
  0x4b   :  { %p249_p6 = pnand %p247_p5, %p244_p4 }
  0x4d   :  { %252 = shalt.err (!%p249_p6)
}
  0x4e   :  { %117 = dma.vmem_to_hbm [thread:$0]  %s115_s29, 128, %s334_s2, [#allocation6]  }
  0x4f   :  { %257 = dma.done.wait [#allocation6], 128  }
  0x50   :  { %258 = vsyncadd [#allocation6], 4294967168 }
  0x51   :  { %121 = vsyncpa [#allocation5], 1 }
  0x52   :  { %122 = vsyncpa [#allocation6], 1 }

</bundles_post_ra>
